<compile_context>
chip_gen: v5e
topology: v5e:2x2
jax: 0.10.0
libtpu: 0.0.40
codegen_flags: <defaults>
</compile_context>

<pallas_src>
import functools

import jax
import jax.numpy as jnp
from jax.experimental import pallas as pl
from jax.experimental.pallas import tpu as pltpu


def _round_up(a, m):
    return -(-a // m) * m


def _abmilp_kernel(x_ref, w1_ref, b1_ref, w2_ref, out_ref,
                   m_scr, l_scr, acc_scr, *, n_valid):
    """One (batch block, token tile) step of ABMILP attention pooling."""
    t = pl.program_id(1)

    @pl.when(t == 0)
    def _init():
        m_scr[...] = jnp.full_like(m_scr, -jnp.inf)
        l_scr[...] = jnp.zeros_like(l_scr)
        acc_scr[...] = jnp.zeros_like(acc_scr)

    Bb, tn, D = x_ref.shape
    x = x_ref[...]                                            # (Bb, tn, D) f32

    # 1) Hidden layer on the MXU: bf16 operands, f32 accumulate.  tn % 8 == 0,
    #    so the flatten / unflatten reshapes are layout no-ops.
    h = jnp.tanh(
        jnp.dot(x.reshape(Bb * tn, D).astype(jnp.bfloat16), w1_ref[...],
                preferred_element_type=jnp.float32)
        + b1_ref[...]                                         # (1, D) f32
    ).reshape(Bb, tn, D)

    # 2) Score projection (D -> 1) on the VPU/XLU (elementwise * + lane reduce)
    #    instead of a 1-lane MXU matmul.  b2 is intentionally omitted: softmax
    #    shift-invariance makes it a no-op for the pooled output.
    s = jnp.sum(h * w2_ref[...], axis=-1, keepdims=True)      # (Bb, tn, 1)
    # TODO(synk): for very large N a lane-dense (Bb, tn) score layout would lift
    # exp/max/sum vreg utilization; kept (Bb, tn, 1) to avoid the relayout
    # needed to re-broadcast attn over D.

    # Mask zero-padded token rows (present only when N % 8 != 0).
    if n_valid % tn != 0:
        tok = t * tn + jax.lax.broadcasted_iota(jnp.int32, (Bb, tn, 1), 1)
        s = jnp.where(tok < n_valid, s, -jnp.inf)

    # 3) Online (flash-style) softmax over the token axis.
    m_prev = m_scr[...]                                       # (Bb, 1)
    m_new = jnp.maximum(m_prev, jnp.max(s, axis=1))           # (Bb, 1)
    alpha = jnp.exp(m_prev - m_new)                           # (Bb, 1)  (0 at t==0)
    p = jnp.exp(s - m_new[:, :, None])                        # (Bb, tn, 1)
    l_scr[...] = alpha * l_scr[...] + jnp.sum(p, axis=1)      # (Bb, 1)
    acc_scr[...] = alpha * acc_scr[...] + jnp.sum(x * p, axis=1)   # (Bb, D)
    m_scr[...] = m_new

    # 4) Finalize with exact normalization (no approx reciprocal).
    @pl.when(t == pl.num_programs(1) - 1)
    def _fin():
        out_ref[...] = (acc_scr[...] / l_scr[...]).astype(out_ref.dtype)


def abmilp_head(x, w1, b1, w2, b2=None):
    """ABMILP attention pooling.

    x:  (B, N, D) float32
    w1: (D, D)    first Linear weight laid out so h = tanh(x @ w1 + b1)
    b1: (D,) or (1, D)
    w2: (D,) or (D, 1)   second Linear weight (dim -> 1)
    b2: accepted for API parity; mathematically a no-op (softmax shift-invariance)
    Returns (B, D) float32.
    """
    del b2
    B, N, D = x.shape
    x = jnp.asarray(x, jnp.float32)
    w1_bf = jnp.asarray(w1, jnp.float32).astype(jnp.bfloat16)   # bf16 MXU operand
    b1_row = jnp.asarray(b1, jnp.float32).reshape(1, D)
    w2_row = jnp.asarray(w2, jnp.float32).reshape(1, D)

    # ---- per-generation VMEM budget ---------------------------------------
    try:
        vmem_cap = int(pltpu.get_tpu_info().vmem_capacity_bytes)
    except Exception:
        vmem_cap = 64 << 20                 # conservative (v7x-sized) fallback
    usable = (vmem_cap * 3) // 4            # ~48 MiB on v7x, ~96 MiB on v5e/v6e

    # ---- tiling plan --------------------------------------------------------
    N8 = _round_up(N, 8)                    # sublane-aligned token count
    tile_budget = max(usable // 4, 1 << 20)          # one f32 (block_b, tn, D) tile
    row_cap = max(tile_budget // (D * 4), 8)         # bound on block_b * tn
    if N8 <= row_cap:
        tn = N8                                       # whole sequence per step
    else:
        tn, d = 8, 8                                  # largest x8 divisor of N8
        while d <= min(row_cap, N8):
            if N8 % d == 0:
                tn = d
            d += 8
    grid_n = N8 // tn
    bb_cap = max(row_cap // tn, 1)
    # Keep >= 2 batch grid steps when B allows so the "parallel" axis actually
    # splits across v7x's two TensorCores (and restores cross-step pipelining).
    target_bb = max(1, min(bb_cap, -(-B // 2) if B >= 2 else 1))

    block_b, B_pad = None, B
    for c in range(min(target_bb, B), 0, -1):         # divisor of B -> no batch pad
        if B % c == 0 and (c % 8 == 0 or c == B):
            block_b = c
            break
    if block_b is None:
        if B <= bb_cap:
            block_b = B                    # single batch step, still no pad copy
        else:
            block_b = max(8 * (target_bb // 8), 8)    # rare fallback: pad batch
            B_pad = _round_up(B, block_b)
    grid_b = B_pad // block_b

    if B_pad != B or N8 != N:
        # Zero padding is safe: padded batch rows pool to values sliced away
        # below; padded token rows are masked to -inf inside the kernel.
        x = jnp.pad(x, ((0, B_pad - B), (0, N8 - N), (0, 0)))

    # ---- VMEM accounting / compiler params ---------------------------------
    x_tile = block_b * tn * D * 4
    w1_bytes = D * D * 2
    w1_single_buffer = w1_bytes >= (2 << 20)          # constant index_map
    vmem_est = (2 * x_tile                 # x double-buffered (f32)
                + x_tile                   # h (f32)
                + x_tile // 2              # bf16 cast of x
                + (1 if w1_single_buffer else 2) * w1_bytes
                + 4 * block_b * D * 4      # out double-buffer + acc scratch
                + (2 << 20))               # Mosaic internal scratch slack
    vmem_limit = int(min(max(vmem_est, 32 << 20), usable))

    w1_kwargs = {"pipeline_mode": pl.Buffered(1)} if w1_single_buffer else {}

    cost = pl.CostEstimate(
        flops=2 * B_pad * N8 * D * D + 6 * B_pad * N8 * D,
        transcendentals=B_pad * N8 * (D + 1),
        bytes_accessed=B_pad * N8 * D * 4 + w1_bytes + 2 * D * 4 + B_pad * D * 4,
    )

    kernel = functools.partial(_abmilp_kernel, n_valid=N)

    out = pl.pallas_call(
        kernel,
        out_shape=jax.ShapeDtypeStruct((B_pad, D), jnp.float32),
        grid_spec=pltpu.PrefetchScalarGridSpec(
            num_scalar_prefetch=0,
            grid=(grid_b, grid_n),
            in_specs=[
                pl.BlockSpec((block_b, tn, D), lambda b, t: (b, t, 0)),   # x tile
                pl.BlockSpec((D, D), lambda b, t: (0, 0), **w1_kwargs),   # W1 (bf16)
                pl.BlockSpec((1, D), lambda b, t: (0, 0)),                # b1
                pl.BlockSpec((1, D), lambda b, t: (0, 0)),                # W2 row
            ],
            out_specs=pl.BlockSpec((block_b, D), lambda b, t: (b, 0)),
            scratch_shapes=[
                pltpu.VMEM((block_b, 1), jnp.float32),   # running max
                pltpu.VMEM((block_b, 1), jnp.float32),   # running denominator
                pltpu.VMEM((block_b, D), jnp.float32),   # running weighted sum
            ],
        ),
        compiler_params=pltpu.CompilerParams(
            dimension_semantics=("parallel", "arbitrary"),
            vmem_limit_bytes=vmem_limit,
        ),
        cost_estimate=cost,
    )(x, w1_bf, b1_row, w2_row)

    return out[:B] if B_pad != B else out


def _reference(x, w1, b1, w2, b2):
    # pure-JAX f32 reference of the PyTorch forward
    h = jnp.tanh(x @ w1 + b1)                 # (B, N, D)
    s = h @ w2 + b2                           # (B, N, 1)
    a = jax.nn.softmax(s, axis=1)             # softmax over tokens
    return jnp.sum(x * a, axis=1)             # (B, D)


if __name__ == "__main__":
    B, N, D = 2, 8, 32

    key = jax.random.PRNGKey(0)
    kx, k1, k2, k3, k4 = jax.random.split(key, 5)

    scale = 1.0 / jnp.sqrt(jnp.float32(D))
    x = jax.random.normal(kx, (B, N, D), dtype=jnp.float32)
    w1 = jax.random.uniform(k1, (D, D), jnp.float32, -scale, scale)
    b1 = jax.random.uniform(k2, (1, D), jnp.float32, -scale, scale)
    w2 = jax.random.uniform(k3, (D, 1), jnp.float32, -scale, scale)
    b2 = jax.random.uniform(k4, (1, 1), jnp.float32, -scale, scale)

    out = jax.block_until_ready(abmilp_head(x, w1, b1, w2, b2))
    ref = _reference(x, w1, b1, w2, b2)

    assert out.shape == (B, D)
    # bf16 MXU operands (x, W1) are the only source of deviation from the f32
    # reference; the softmax normalization itself is exact.
    err = float(jnp.max(jnp.abs(out - ref)))
    assert jnp.allclose(out, ref, atol=1.5e-2, rtol=1.5e-2), err
    print("KERNEL_OK")
</pallas_src>

<mosaic_0001>
module attributes {stable_mosaic.version = 11 : i64} {
  func.func @_abmilp_kernel(%arg0: i32, %arg1: i32, %arg2: memref<2x8x32xf32, #tpu.memory_space<vmem>>, %arg3: memref<32x32xbf16, #tpu.memory_space<vmem>>, %arg4: memref<1x32xf32, #tpu.memory_space<vmem>>, %arg5: memref<1x32xf32, #tpu.memory_space<vmem>>, %arg6: memref<2x32xf32, #tpu.memory_space<vmem>>, %arg7: memref<2x1xf32, #tpu.memory_space<vmem>>, %arg8: memref<2x1xf32, #tpu.memory_space<vmem>>, %arg9: memref<2x32xf32, #tpu.memory_space<vmem>>) attributes {dimension_semantics = [#tpu.dimension_semantics<parallel>, #tpu.dimension_semantics<arbitrary>], iteration_bounds = array<i64: 1, 1>, scalar_prefetch = 0 : i64, scratch_operands = 3 : i64, tpu.core_type = #tpu.core_type<tc>, window_params = [{transform_indices = @transform_0, window_bounds = array<i64: 2, 8, 32>}, {pipeline_mode = #tpu.pipeline_mode<synchronous>, transform_indices = @transform_1, window_bounds = array<i64: 32, 32>}, {pipeline_mode = #tpu.pipeline_mode<synchronous>, transform_indices = @transform_2, window_bounds = array<i64: 1, 32>}, {pipeline_mode = #tpu.pipeline_mode<synchronous>, transform_indices = @transform_3, window_bounds = array<i64: 1, 32>}, {transform_indices = @transform_4, window_bounds = array<i64: 2, 32>}]} {
    %c0_i32 = arith.constant 0 : i32
    %0 = arith.cmpi eq, %arg1, %c0_i32 : i32
    %1 = arith.extui %0 : i1 to i32
    %c0_i32_0 = arith.constant 0 : i32
    %2 = arith.cmpi ne, %1, %c0_i32_0 : i32
    scf.if %2 {
      %cst_27 = arith.constant 0xFF800000 : f32
      %45 = vector.broadcast %cst_27 : f32 to vector<2x1xf32>
      %c0_28 = arith.constant 0 : index
      %c0_29 = arith.constant 0 : index
      %46 = vector.load %arg7[%c0_28, %c0_29] : memref<2x1xf32, #tpu.memory_space<vmem>>, vector<2x1xf32>
      tpu.vector_store %arg7[%c0_28, %c0_29], %45 {strides = array<i32>} : memref<2x1xf32, #tpu.memory_space<vmem>>, vector<2x1xf32>,
      %cst_30 = arith.constant 0.000000e+00 : f32
      %47 = vector.broadcast %cst_30 : f32 to vector<2x1xf32>
      %c0_31 = arith.constant 0 : index
      %c0_32 = arith.constant 0 : index
      %48 = vector.load %arg8[%c0_31, %c0_32] : memref<2x1xf32, #tpu.memory_space<vmem>>, vector<2x1xf32>
      tpu.vector_store %arg8[%c0_31, %c0_32], %47 {strides = array<i32>} : memref<2x1xf32, #tpu.memory_space<vmem>>, vector<2x1xf32>,
      %cst_33 = arith.constant 0.000000e+00 : f32
      %49 = vector.broadcast %cst_33 : f32 to vector<2x32xf32>
      %c0_34 = arith.constant 0 : index
      %c0_35 = arith.constant 0 : index
      %50 = vector.load %arg9[%c0_34, %c0_35] : memref<2x32xf32, #tpu.memory_space<vmem>>, vector<2x32xf32>
      tpu.vector_store %arg9[%c0_34, %c0_35], %49 {strides = array<i32>} : memref<2x32xf32, #tpu.memory_space<vmem>>, vector<2x32xf32>,
    } else {
    }
    %c0 = arith.constant 0 : index
    %c0_1 = arith.constant 0 : index
    %c0_2 = arith.constant 0 : index
    %3 = vector.load %arg2[%c0, %c0_1, %c0_2] : memref<2x8x32xf32, #tpu.memory_space<vmem>>, vector<2x8x32xf32>
    %4 = vector.shape_cast %3 : vector<2x8x32xf32> to vector<16x32xf32>
    %5 = arith.truncf %4 : vector<16x32xf32> to vector<16x32xbf16>
    %c0_3 = arith.constant 0 : index
    %c0_4 = arith.constant 0 : index
    %6 = vector.load %arg3[%c0_3, %c0_4] : memref<32x32xbf16, #tpu.memory_space<vmem>>, vector<32x32xbf16>
    %cst = arith.constant dense<0.000000e+00> : vector<16x32xf32>
    %7 = tpu.matmul %5, %6, %cst {dimension_numbers = #tpu.dot_dimension_numbers<[1], [0], [0], [1], [0, 0, 1, 1], [], []>} : vector<16x32xbf16>, vector<32x32xbf16>, vector<16x32xf32> -> vector<16x32xf32>
    %c0_5 = arith.constant 0 : index
    %c0_6 = arith.constant 0 : index
    %8 = vector.load %arg4[%c0_5, %c0_6] : memref<1x32xf32, #tpu.memory_space<vmem>>, vector<1x32xf32>
    %9 = vector.broadcast %8 : vector<1x32xf32> to vector<16x32xf32>
    %10 = arith.addf %7, %9 : vector<16x32xf32>
    %11 = math.tanh %10 : vector<16x32xf32>
    %12 = vector.shape_cast %11 : vector<16x32xf32> to vector<2x8x32xf32>
    %c0_7 = arith.constant 0 : index
    %c0_8 = arith.constant 0 : index
    %13 = vector.load %arg5[%c0_7, %c0_8] : memref<1x32xf32, #tpu.memory_space<vmem>>, vector<1x32xf32>
    %14 = vector.shape_cast %13 : vector<1x32xf32> to vector<1x1x32xf32>
    %15 = vector.broadcast %14 : vector<1x1x32xf32> to vector<2x8x32xf32>
    %16 = arith.mulf %12, %15 : vector<2x8x32xf32>
    %cst_9 = arith.constant dense<0.000000e+00> : vector<2x8xf32>
    %17 = vector.multi_reduction <add>, %16, %cst_9 [2] : vector<2x8x32xf32> to vector<2x8xf32>
    %18 = vector.shape_cast %17 : vector<2x8xf32> to vector<2x8x1xf32>
    %c0_10 = arith.constant 0 : index
    %c0_11 = arith.constant 0 : index
    %19 = vector.load %arg7[%c0_10, %c0_11] : memref<2x1xf32, #tpu.memory_space<vmem>>, vector<2x1xf32>
    %cst_12 = arith.constant dense<0xFF800000> : vector<2x1xf32>
    %20 = vector.multi_reduction <maximumf>, %18, %cst_12 [1] : vector<2x8x1xf32> to vector<2x1xf32>
    %21 = arith.maximumf %19, %20 : vector<2x1xf32>
    %22 = arith.subf %19, %21 : vector<2x1xf32>
    %23 = math.exp %22 : vector<2x1xf32>
    %24 = vector.shape_cast %21 : vector<2x1xf32> to vector<2x1x1xf32>
    %25 = vector.broadcast %24 : vector<2x1x1xf32> to vector<2x8x1xf32>
    %26 = arith.subf %18, %25 : vector<2x8x1xf32>
    %27 = math.exp %26 : vector<2x8x1xf32>
    %c0_13 = arith.constant 0 : index
    %c0_14 = arith.constant 0 : index
    %28 = vector.load %arg8[%c0_13, %c0_14] : memref<2x1xf32, #tpu.memory_space<vmem>>, vector<2x1xf32>
    %29 = arith.mulf %23, %28 : vector<2x1xf32>
    %cst_15 = arith.constant dense<0.000000e+00> : vector<2x1xf32>
    %30 = vector.multi_reduction <add>, %27, %cst_15 [1] : vector<2x8x1xf32> to vector<2x1xf32>
    %31 = arith.addf %29, %30 : vector<2x1xf32>
    %c0_16 = arith.constant 0 : index
    %c0_17 = arith.constant 0 : index
    %32 = vector.load %arg8[%c0_16, %c0_17] : memref<2x1xf32, #tpu.memory_space<vmem>>, vector<2x1xf32>
    tpu.vector_store %arg8[%c0_16, %c0_17], %31 {strides = array<i32>} : memref<2x1xf32, #tpu.memory_space<vmem>>, vector<2x1xf32>,
    %c0_18 = arith.constant 0 : index
    %c0_19 = arith.constant 0 : index
    %33 = vector.load %arg9[%c0_18, %c0_19] : memref<2x32xf32, #tpu.memory_space<vmem>>, vector<2x32xf32>
    %34 = vector.broadcast %23 : vector<2x1xf32> to vector<2x32xf32>
    %35 = arith.mulf %34, %33 : vector<2x32xf32>
    %36 = vector.broadcast %27 : vector<2x8x1xf32> to vector<2x8x32xf32>
    %37 = arith.mulf %3, %36 : vector<2x8x32xf32>
    %cst_20 = arith.constant dense<0.000000e+00> : vector<2x32xf32>
    %38 = vector.multi_reduction <add>, %37, %cst_20 [1] : vector<2x8x32xf32> to vector<2x32xf32>
    %39 = arith.addf %35, %38 : vector<2x32xf32>
    %c0_21 = arith.constant 0 : index
    %c0_22 = arith.constant 0 : index
    %40 = vector.load %arg9[%c0_21, %c0_22] : memref<2x32xf32, #tpu.memory_space<vmem>>, vector<2x32xf32>
    tpu.vector_store %arg9[%c0_21, %c0_22], %39 {strides = array<i32>} : memref<2x32xf32, #tpu.memory_space<vmem>>, vector<2x32xf32>,
    %c0_23 = arith.constant 0 : index
    %c0_24 = arith.constant 0 : index
    %41 = vector.load %arg7[%c0_23, %c0_24] : memref<2x1xf32, #tpu.memory_space<vmem>>, vector<2x1xf32>
    tpu.vector_store %arg7[%c0_23, %c0_24], %21 {strides = array<i32>} : memref<2x1xf32, #tpu.memory_space<vmem>>, vector<2x1xf32>,
    %c0_i32_25 = arith.constant 0 : i32
    %42 = arith.cmpi eq, %arg1, %c0_i32_25 : i32
    %43 = arith.extui %42 : i1 to i32
    %c0_i32_26 = arith.constant 0 : i32
    %44 = arith.cmpi ne, %43, %c0_i32_26 : i32
    scf.if %44 {
      %c0_27 = arith.constant 0 : index
      %c0_28 = arith.constant 0 : index
      %45 = vector.load %arg9[%c0_27, %c0_28] : memref<2x32xf32, #tpu.memory_space<vmem>>, vector<2x32xf32>
      %c0_29 = arith.constant 0 : index
      %c0_30 = arith.constant 0 : index
      %46 = vector.load %arg8[%c0_29, %c0_30] : memref<2x1xf32, #tpu.memory_space<vmem>>, vector<2x1xf32>
      %47 = vector.broadcast %46 : vector<2x1xf32> to vector<2x32xf32>
      %48 = arith.divf %45, %47 : vector<2x32xf32>
      %c0_31 = arith.constant 0 : index
      %c0_32 = arith.constant 0 : index
      %49 = vector.load %arg6[%c0_31, %c0_32] : memref<2x32xf32, #tpu.memory_space<vmem>>, vector<2x32xf32>
      tpu.vector_store %arg6[%c0_31, %c0_32], %48 {strides = array<i32>} : memref<2x32xf32, #tpu.memory_space<vmem>>, vector<2x32xf32>,
    } else {
    }
    return
  }
  func.func @transform_0(%arg0: i32, %arg1: i32) -> (i32, i32, i32) {
    %c0_i32 = arith.constant 0 : i32
    %c0_i32_0 = arith.constant 0 : i32
    return %arg0, %arg1, %c0_i32 : i32, i32, i32
  }
  func.func @transform_1(%arg0: i32, %arg1: i32) -> (i32, i32) {
    %c0_i32 = arith.constant 0 : i32
    %c0_i32_0 = arith.constant 0 : i32
    %c0_i32_1 = arith.constant 0 : i32
    return %c0_i32, %c0_i32_0 : i32, i32
  }
  func.func @transform_2(%arg0: i32, %arg1: i32) -> (i32, i32) {
    %c0_i32 = arith.constant 0 : i32
    %c0_i32_0 = arith.constant 0 : i32
    %c0_i32_1 = arith.constant 0 : i32
    return %c0_i32, %c0_i32_0 : i32, i32
  }
  func.func @transform_3(%arg0: i32, %arg1: i32) -> (i32, i32) {
    %c0_i32 = arith.constant 0 : i32
    %c0_i32_0 = arith.constant 0 : i32
    %c0_i32_1 = arith.constant 0 : i32
    return %c0_i32, %c0_i32_0 : i32, i32
  }
  func.func @transform_4(%arg0: i32, %arg1: i32) -> (i32, i32) {
    %c0_i32 = arith.constant 0 : i32
    %c0_i32_0 = arith.constant 0 : i32
    return %arg0, %c0_i32 : i32, i32
  }
}

</mosaic_0001>

<bundles_post_ra>
// kernel: tpu_custom_call.1
= control target key start
LH: loop header
LB: loop body
LE: loop exit
PB: predicated region body
PF: predicated region fallthrough
CT: control target
= control target key end

     0   :  { %9 = vsyncpa [#allocation6], 0  ;;  %s449_s0 = inlined_call_operand.hbm [shape: f32[2,8,32], index: 0, kind: input, shape index: {}]   ;;  %s450_s1 = inlined_call_operand.hbm [shape: bf16[32,32], index: 1, kind: input, shape index: {}]   ;;  %s451_s2 = inlined_call_operand.vmem [shape: f32[1,32], index: 2, kind: input, shape index: {}]   ;;  %s452_s3 = inlined_call_operand.vmem [shape: f32[1,32], index: 3, kind: input, shape index: {}]   ;;  %s453_s4 = inlined_call_operand.hbm [shape: f32[2,32], index: 4, kind: output, shape index: {}]  }
   0x1   :  { %10 = vsyncpa [#allocation9], 0 }
   0x2   :  { %11 = vsyncpa [#allocation7], 0  ;;  %s16_s17 = sshll.u32 %s449_s0, 4  ;;  %s374_s18 = smov [#allocation5]   ;;  %s17_s17 = int_to_ptr.hbm [resolvable:$true] %s16_s17 }
   0x3   :  { %s18_s19 = sshll.u32 %s374_s18, 4  ;;  %s29_s22 = sshll.u32 %s450_s1, 4  ;;  %s19_s19 = int_to_ptr.vmem [resolvable:$true] %s18_s19  ;;  %s30_s22 = int_to_ptr.hbm [resolvable:$true] %s29_s22 }
   0x4   :  { %s375_s23 = smov 128   ;;  %s376_s24 = smov 8  }
   0x5   :  { %24 = dma.hbm_to_vmem [thread:$0]  %s17_s17, 256, %s19_s19, [#allocation6], %s375_s23, %s375_s23, %s376_s24  }
   0x6   :  { %s377_s25 = smov [#allocation8]   ;;  %s378_s27 = smov 64  }
   0x7   :  { %s31_s26 = sshll.u32 %s377_s25, 4  ;;  %s379_s28 = smov 4   ;;  %s32_s26 = int_to_ptr.vmem [resolvable:$true] %s31_s26 }
   0x8   :  { %37 = dma.hbm_to_vmem [thread:$0]  %s30_s22, 256, %s32_s26, [#allocation9], %s378_s27, %s378_s27, %s379_s28  }
   0x9   :  { %368 = dma.done.wait [#allocation6], 256  }
   0xa   :  { %369 = vsyncadd [#allocation6], 4294967040 }
   0xb   :  { %370 = dma.done.wait [#allocation9], 256  }
   0xc   :  { %371 = vsyncadd [#allocation9], 4294967040  ;;  %v268_v0 = vld [vmem:[#allocation8 + $0x8] sm:$0xff]  ;;  %v267_v1 = vld [vmem:[#allocation8] sm:$0xff]  ;;  %vm83_vm0 = vcmask 261120   ;;  %vm55_vm1 = vcmask 1024  }
   0xd   :  { %93 = vmatpush.bf16.msra.mxu0 %v268_v0  ;;  %v415_v2 = vld [vmem:[#allocation5] sm:$0xff]  ;;  %v417_v3 = vld [vmem:[#allocation5 + $0x8] sm:$0xff]  ;;  %v282_v5 = vld [vmem:[%s451_s2] ss:$0 sm:$0xff]  ;;  %v380_v17 = vmov -inf   ;;  %v381_v18 = vmov 0.0  }
   0xe   :  { %v62_v4 = vpack.c.bf16 %v417_v3, %v415_v2  ;;  %v283_v8 = vld [vmem:[%s452_s3] ss:$0 sm:$0xff]  ;;  %56 = vst.msk [vmem:[#allocation2] sm:$0x3] %vm55_vm1, %v380_v17  ;;  %v382_v22 = vmov 0   ;;  %vm130_vm2 = vcmask 1041409  }
   0xf   :  { %57 = vst.msk [vmem:[#allocation3] sm:$0x3] %vm55_vm1, %v381_v18  ;;  %279 = vset.pattern.permute.xlu1 %v382_v22  ;;  %280 = vset.pattern.permute.xlu2 %v382_v22  ;;  %vm151_vm3 = vcmask 7168   ;;  %vm58_vm4 = vcmask 254976   ;;  %s383_s2 = smov [#allocation10]   ;;  %s247_s7 = sshll.u32 %s453_s4, 4  ;;  %s248_s7 = int_to_ptr.hbm [resolvable:$true] %s247_s7 }
  0x10   :  { %281 = vset.pattern.permute.xlu0 %v382_v22  ;;  %59 = vst.msk [vmem:[#allocation4] sm:$0x3] %vm58_vm4, %v381_v18  ;;  %s245_s3 = sshll.u32 %s383_s2, 4  ;;  %s246_s3 = int_to_ptr.vmem [resolvable:$true] %s245_s3 }
  0x11   :  { %94 = vmatpush.bf16.msra.mxu0 %v267_v1 }
  0x14   :  { %266 = vmatmul.msk.bf16.vlgmr.msra.gmra.mxu0 %vm83_vm0, %v62_v4 }
  0x15   :  { %v115_v33 = vld [vmem:[#allocation2] sm:$0x3] }
  0x16   :  { %v149_v60 = vld [vmem:[#allocation3] sm:$0x3] }
  0x91   :  { %v96_v6 = vpop.f32.mrf.mxu0 }
  0x92   :  { %v97_v7 = vadd.f32 %v282_v5, %v96_v6 }
  0x94   :  { %284 = vtanh.f32 %v97_v7 }
  0x99   :  { %v98_v9 = vpop.f32.mrf.mxu0 }
  0x9a   :  { %v285_v10 = vpop.eup %284  ;;  %v99_v11 = vadd.f32 %v282_v5, %v98_v9 }
  0x9b   :  { %v107_v12 = vmul.f32 %v285_v10, %v283_v8 }
  0x9c   :  { %286 = vtanh.f32 %v99_v11 }
  0x9d   :  { %v109_v13 = vsel %vm83_vm0, %v107_v12, 0.0 }
  0x9e   :  { %110 = vadd.xlane.f32.xlu0 %v109_v13 }
  0xa2   :  { %v287_v14 = vpop.eup %286 }
  0xa3   :  { %v108_v15 = vmul.f32 %v287_v14, %v283_v8 }
  0xa5   :  { %v112_v16 = vsel %vm83_vm0, %v108_v15, 0.0 }
  0xa6   :  { %113 = vadd.xlane.f32.xlu0 %v112_v16 }
 0x111   :  { %v111_v19 = vpop.xlane.xlu0 %110 }
 0x112   :  { %v116_v20 = vrot.slane %v111_v19, 4 }
 0x114   :  { %v117_v21 = vmax.f32 %v111_v19, %v116_v20 }
 0x116   :  { %v118_v23 = vrot.slane %v117_v21, 2 }
 0x118   :  { %v119_v26 = vmax.f32 %v117_v21, %v118_v23 }
 0x119   :  { %v114_v24 = vpop.xlane.xlu0 %113 }
 0x11a   :  { %v122_v25 = vrot.slane %v114_v24, 4  ;;  %v120_v29 = vrot.slane %v119_v26, 1 }
 0x11c   :  { %v123_v27 = vmax.f32 %v114_v24, %v122_v25  ;;  %v121_v32 = vmax.f32 %v119_v26, %v120_v29  ;;  %v173_v25 = vld [vmem:[#allocation4] sm:$0x3] }
 0x11e   :  { %v124_v28 = vrot.slane %v123_v27, 2 }
 0x120   :  { %v125_v30 = vmax.f32 %v123_v27, %v124_v28 }
 0x122   :  { %v126_v31 = vrot.slane %v125_v30, 1 }
 0x124   :  { %v127_v34 = vmax.f32 %v125_v30, %v126_v31 }
 0x126   :  { %v131_v35 = vsel %vm130_vm2, %v127_v34, %v121_v32 }
 0x127   :  { %v133_v36 = vmax.f32 %v115_v33, %v131_v35 }
 0x129   :  { %v138_v37 = vrot.slane %v133_v36, 1  ;;  %213 = vst.msk [vmem:[#allocation2] sm:$0x3] %vm55_vm1, %v133_v36  ;;  %v139_v38 = vperm.slane %v133_v36, 0  ;;  %v134_v44 = vsub.f32 %v115_v33, %v133_v36 }
 0x12b   :  { %v140_v39 = vperm.slane %v138_v37, 0  ;;  %v143_v40 = vsub.f32 %v111_v19, %v139_v38  ;;  %v135_v48 = vmul.f32 1.442695, %v134_v44 }
 0x12d   :  { %v144_v41 = vsub.f32 %v114_v24, %v140_v39  ;;  %v145_v42 = vmul.f32 1.442695, %v143_v40 }
 0x12f   :  { %v147_v43 = vmul.f32 1.442695, %v144_v41  ;;  %288 = vpow2.f32 %v145_v42 }
 0x131   :  { %290 = vpow2.f32 %v147_v43 }
 0x132   :  { %292 = vpow2.f32 %v135_v48 }
 0x135   :  { %v289_v45 = vpop.eup %288 }
 0x136   :  { %182 = vperm.xlu1 %279, %v289_v45   ;;  %v152_v46 = vsel %vm151_vm3, %v289_v45, 0.0 }
 0x137   :  { %v291_v47 = vpop.eup %290  ;;  %v153_v49 = vrot.slane %v152_v46, 4 }
 0x138   :  { %v159_v50 = vsel %vm151_vm3, %v291_v47, 0.0  ;;  %v293_v59 = vpop.eup %292 }
 0x139   :  { %v160_v51 = vrot.slane %v159_v50, 4  ;;  %v154_v52 = vadd.f32 %v153_v49, %v152_v46  ;;  %v150_v0 = vmul.f32 %v293_v59, %v149_v60 }
 0x13b   :  { %v161_v53 = vadd.f32 %v160_v51, %v159_v50  ;;  %v155_v54 = vrot.slane %v154_v52, 2 }
 0x13d   :  { %v162_v55 = vrot.slane %v161_v53, 2  ;;  %v156_v56 = vadd.f32 %v155_v54, %v154_v52 }
 0x13e   :  { %187 = vperm.xlu1 %279, %v291_v47  }
 0x13f   :  { %v163_v57 = vadd.f32 %v162_v55, %v161_v53  ;;  %v157_v58 = vrot.slane %v156_v56, 1 }
 0x141   :  { %v164_v61 = vrot.slane %v163_v57, 1  ;;  %v158_v63 = vadd.f32 %v157_v58, %v156_v56 }
 0x143   :  { %v165_v62 = vadd.f32 %v164_v61, %v163_v57 }
 0x145   :  { %v168_v1 = vsel %vm130_vm2, %v165_v62, %v158_v63 }
 0x146   :  { %v170_v4 = vadd.f32 %v168_v1, %v150_v0 }
 0x148   :  { %172 = vst.msk [vmem:[#allocation3] sm:$0x3] %vm55_vm1, %v170_v4 }
 0x14f   :  { %v218_v5 = vld [vmem:[#allocation3] sm:$0x3] }
 0x150   :  { %221 = vperm.xlu2 %280, %v218_v5  }
 0x158   :  { %176 = vperm.xlu2 %280, %v293_v59  }
 0x1a8   :  { %v183_v6 = vpop.permute.xlu1 %182 }
 0x1a9   :  { %v190_v7 = vmul.f32 %v183_v6, %v415_v2 }
 0x1aa   :  { %v222_v9 = vpop.permute.xlu2 %221 }
 0x1ab   :  { %v192_v8 = vsel %vm83_vm0, %v190_v7, 0.0  ;;  %294 = vrcp.f32 %v222_v9  ;;  %v235_v33 = vand.u32 2147483648, %v222_v9  ;;  %vm229_vm6 = vweird.f32 %v222_v9 }
 0x1ac   :  { %v193_v10 = vrot.slane %v192_v8, 4  ;;  %v233_v34 = vand.u32 2147483647, %v222_v9 }
 0x1ad   :  { %v236_v36 = vor.u32 1.1754944e-38, %v235_v33 }
 0x1ae   :  { %v194_v11 = vadd.f32 %v193_v10, %v192_v8  ;;  %vm234_vm8 = vcmp.eq.f32.partialorder %v233_v34, 8.507059e+37 }
 0x1b0   :  { %v188_v12 = vpop.permute.xlu1 %187  ;;  %v195_v14 = vrot.slane %v194_v11, 2 }
 0x1b1   :  { %v191_v13 = vmul.f32 %v188_v12, %v417_v3  ;;  %v295_v16 = vpop.eup %294 }
 0x1b2   :  { %v196_v19 = vadd.f32 %v195_v14, %v194_v11  ;;  %v225_v18 = vmul.f32 %v295_v16, %v222_v9  ;;  %v177_v26 = vpop.permute.xlu2 %176  ;;  %vm230_vm5 = vweird.f32 %v295_v16 }
 0x1b3   :  { %v199_v15 = vsel %vm83_vm0, %v191_v13, 0.0  ;;  %v179_v30 = vmul.f32 %v177_v26, %v173_v25  ;;  %vm231_vm7 = vmor %vm229_vm6, %vm230_vm5 }
 0x1b4   :  { %v200_v17 = vrot.slane %v199_v15, 4  ;;  %v197_v22 = vrot.slane %v196_v19, 1  ;;  %v226_v23 = vsub.f32 1.0, %v225_v18 }
 0x1b6   :  { %v201_v20 = vadd.f32 %v200_v17, %v199_v15  ;;  %v198_v27 = vadd.f32 %v197_v22, %v196_v19  ;;  %v227_v29 = vmul.f32 %v295_v16, %v226_v23 }
 0x1b8   :  { %v202_v21 = vrot.slane %v201_v20, 2  ;;  %v228_v32 = vadd.f32 %v295_v16, %v227_v29 }
 0x1ba   :  { %v203_v2 = vadd.f32 %v202_v21, %v201_v20  ;;  %v232_v35 = vsel %vm231_vm7, %v295_v16, %v228_v32 }
 0x1bb   :  { %v237_v38 = vsel %vm234_vm8, %v236_v36, %v232_v35 }
 0x1bc   :  { %v204_v24 = vrot.slane %v203_v2, 1 }
 0x1be   :  { %v205_v28 = vadd.f32 %v204_v24, %v203_v2 }
 0x1c0   :  { %v208_v3 = vsel %vm130_vm2, %v205_v28, %v198_v27 }
 0x1c1   :  { %v210_v31 = vadd.f32 %v208_v3, %v179_v30 }
 0x1c3   :  { %212 = vst.msk [vmem:[#allocation4] sm:$0x3] %vm58_vm4, %v210_v31 }
 0x1ca   :  { %v217_v37 = vld [vmem:[#allocation4] sm:$0x3] }
 0x1cb   :  { %v238_v39 = vmul.f32 %v237_v38, %v217_v37 }
 0x1cd   :  { %239 = vst.msk [vmem:[#allocation10] sm:$0x3] %vm58_vm4, %v238_v39 }
 0x1ce   :  { %250 = dma.vmem_to_hbm [thread:$0]  %s246_s3, 32, %s248_s7, [#allocation7]  }
 0x1cf   :  { %372 = dma.done.wait [#allocation7], 32  }
 0x1d0   :  { %373 = vsyncadd [#allocation7], 4294967264 }
 0x1d1   :  { %255 = vsyncpa [#allocation6], 1 }
 0x1d2   :  { %256 = vsyncpa [#allocation9], 1 }
 0x1d3   :  { %257 = vsyncpa [#allocation7], 1 }

</bundles_post_ra>
